<compile_context>
chip_gen: v7x
topology: tpu7x:2x2x1
jax: 0.10.0
libtpu: 0.0.40
codegen_flags: <defaults>
</compile_context>

<pallas_src>
import jax
import jax.numpy as jnp
from jax.experimental import pallas as pl
from jax.experimental.pallas import tpu as pltpu


def _lstm_kernel(x_ref, w_ih_ref, w_hh_ref, b_ref, w_out_ref, b_out_ref,
                 out_ref):
    # x_ref:    (S*Bp, I)  time-major, batch-padded, flattened input
    # w_ih_ref: (I, 4H)    transposed weight_ih
    # w_hh_ref: (H, 4H)    transposed weight_hh
    # b_ref:    (1, 4H)    bias_ih + bias_hh
    # w_out_ref:(H, O)     transposed linear weight
    # b_out_ref:(1, O)
    # out_ref:  (Bp, O)
    SB = x_ref.shape[0]
    H4 = w_hh_ref.shape[1]
    H = H4 // 4
    Bp = out_ref.shape[0]
    S = SB // Bp

    w_hh = w_hh_ref[...]                              # keep resident in vregs

    # ---- Phase 1: hoisted input projection, one big MXU op for all steps ----
    gx = (jnp.dot(x_ref[...], w_ih_ref[...],
                  preferred_element_type=jnp.float32)
          + b_ref[...])                               # (S*Bp, 4H)

    # ---- Phase 2: sequential recurrence (fully unrolled, S is static) ------
    h = jnp.zeros((Bp, H), jnp.float32)
    c = jnp.zeros((Bp, H), jnp.float32)

    for t in range(S):                                # static unroll
        gates = gx[t * Bp:(t + 1) * Bp, :] + jnp.dot(
            h, w_hh, preferred_element_type=jnp.float32)   # (Bp, 4H)
        # Whole-vreg transcendentals, then lane slices for the gate math.
        sig = jax.nn.sigmoid(gates)
        tnh = jnp.tanh(gates)
        i_g = sig[:, 0 * H:1 * H]
        f_g = sig[:, 1 * H:2 * H]
        g_g = tnh[:, 2 * H:3 * H]
        o_g = sig[:, 3 * H:4 * H]
        c = f_g * c + i_g * g_g
        h = o_g * jnp.tanh(c)

    # ---- Phase 3: final Linear on the last hidden state ---------------------
    out_ref[...] = (jnp.dot(h, w_out_ref[...],
                            preferred_element_type=jnp.float32)
                    + b_out_ref[...])


def lstm_model_forward(x, w_ih, w_hh, b_ih, b_hh, w_lin, b_lin):
    """x: (B, S, I) float32. Returns (B, 1, O) float32 (matches PyTorch model)."""
    x = x.astype(jnp.float32)
    B, S, I = x.shape
    H = w_hh.shape[1]
    O = w_lin.shape[0]

    # Pad batch to one sublane tile (8) so all (B, .) tiles are dense.
    Bp = ((B + 7) // 8) * 8

    x_tm = jnp.transpose(x, (1, 0, 2))               # (S, B, I) time-major
    if Bp != B:
        x_tm = jnp.pad(x_tm, ((0, 0), (0, Bp - B), (0, 0)))
    x_flat = x_tm.reshape(S * Bp, I)                 # (S*Bp, I)

    w_ih_t = w_ih.T.astype(jnp.float32)              # (I, 4H)
    w_hh_t = w_hh.T.astype(jnp.float32)              # (H, 4H)
    b = (b_ih + b_hh).reshape(1, 4 * H).astype(jnp.float32)
    w_lin_t = w_lin.T.astype(jnp.float32)            # (H, O)
    b_lin2 = b_lin.reshape(1, O).astype(jnp.float32)

    vmem = pl.BlockSpec(memory_space=pltpu.MemorySpace.VMEM)
    out = pl.pallas_call(
        _lstm_kernel,
        out_shape=jax.ShapeDtypeStruct((Bp, O), jnp.float32),
        in_specs=[vmem] * 6,
        out_specs=vmem,
    )(x_flat, w_ih_t, w_hh_t, b, w_lin_t, b_lin2)

    return out[:B].reshape(B, 1, O)                  # drop pad, unsqueeze(1)


def _reference_forward(x, w_ih, w_hh, b_ih, b_hh, w_lin, b_lin):
    """Pure-JAX reference reproducing torch.nn.LSTM + Linear semantics."""
    x = x.astype(jnp.float32)
    B, S, I = x.shape
    H = w_hh.shape[1]
    h = jnp.zeros((B, H), jnp.float32)
    c = jnp.zeros((B, H), jnp.float32)
    for t in range(S):
        gates = x[:, t, :] @ w_ih.T + b_ih + h @ w_hh.T + b_hh
        i_g = jax.nn.sigmoid(gates[:, 0 * H:1 * H])
        f_g = jax.nn.sigmoid(gates[:, 1 * H:2 * H])
        g_g = jnp.tanh(gates[:, 2 * H:3 * H])
        o_g = jax.nn.sigmoid(gates[:, 3 * H:4 * H])
        c = f_g * c + i_g * g_g
        h = o_g * jnp.tanh(c)
    out = h @ w_lin.T + b_lin
    return out[:, None, :]


if __name__ == "__main__":
    # Small shapes implied by the module: (batch, seq, input_size)
    B, S, I, H, O = 4, 8, 16, 32, 8

    key = jax.random.PRNGKey(0)
    kx, k1, k2, k3, k4, k5, k6 = jax.random.split(key, 7)

    # Deterministic parameter init (uniform, PyTorch-like scale 1/sqrt(H)).
    scale = 1.0 / jnp.sqrt(jnp.float32(H))
    x = jax.random.normal(kx, (B, S, I), jnp.float32)
    w_ih = jax.random.uniform(k1, (4 * H, I), jnp.float32, -scale, scale)
    w_hh = jax.random.uniform(k2, (4 * H, H), jnp.float32, -scale, scale)
    b_ih = jax.random.uniform(k3, (4 * H,), jnp.float32, -scale, scale)
    b_hh = jax.random.uniform(k4, (4 * H,), jnp.float32, -scale, scale)
    w_lin = jax.random.uniform(k5, (O, H), jnp.float32, -scale, scale)
    b_lin = jax.random.uniform(k6, (O,), jnp.float32, -scale, scale)

    out = lstm_model_forward(x, w_ih, w_hh, b_ih, b_hh, w_lin, b_lin)
    out = jax.block_until_ready(out)

    ref = _reference_forward(x, w_ih, w_hh, b_ih, b_hh, w_lin, b_lin)
    assert out.shape == (B, 1, O), out.shape
    assert jnp.allclose(out, ref, atol=1e-5, rtol=1e-5), (
        float(jnp.max(jnp.abs(out - ref))))

    print("KERNEL_OK")
</pallas_src>

<mosaic_0001>
module attributes {stable_mosaic.version = 11 : i64} {
  func.func @_lstm_kernel(%arg0: memref<64x16xf32, #tpu.memory_space<vmem>>, %arg1: memref<16x128xf32, #tpu.memory_space<vmem>>, %arg2: memref<32x128xf32, #tpu.memory_space<vmem>>, %arg3: memref<1x128xf32, #tpu.memory_space<vmem>>, %arg4: memref<32x8xf32, #tpu.memory_space<vmem>>, %arg5: memref<1x8xf32, #tpu.memory_space<vmem>>, %arg6: memref<8x8xf32, #tpu.memory_space<vmem>>) attributes {dimension_semantics = [], scalar_prefetch = 0 : i64, scratch_operands = 0 : i64, tpu.core_type = #tpu.core_type<tc>} {
    %c0 = arith.constant 0 : index
    %c0_0 = arith.constant 0 : index
    %0 = vector.load %arg2[%c0, %c0_0] : memref<32x128xf32, #tpu.memory_space<vmem>>, vector<32x128xf32>
    %c0_1 = arith.constant 0 : index
    %c0_2 = arith.constant 0 : index
    %1 = vector.load %arg0[%c0_1, %c0_2] : memref<64x16xf32, #tpu.memory_space<vmem>>, vector<64x16xf32>
    %c0_3 = arith.constant 0 : index
    %c0_4 = arith.constant 0 : index
    %2 = vector.load %arg1[%c0_3, %c0_4] : memref<16x128xf32, #tpu.memory_space<vmem>>, vector<16x128xf32>
    %cst = arith.constant dense<0.000000e+00> : vector<64x128xf32>
    %3 = tpu.matmul %1, %2, %cst {dimension_numbers = #tpu.dot_dimension_numbers<[1], [0], [0], [1], [0, 0, 1, 1], [], []>} : vector<64x16xf32>, vector<16x128xf32>, vector<64x128xf32> -> vector<64x128xf32>
    %c0_5 = arith.constant 0 : index
    %c0_6 = arith.constant 0 : index
    %4 = vector.load %arg3[%c0_5, %c0_6] : memref<1x128xf32, #tpu.memory_space<vmem>>, vector<1x128xf32>
    %5 = vector.broadcast %4 : vector<1x128xf32> to vector<64x128xf32>
    %6 = arith.addf %3, %5 : vector<64x128xf32>
    %cst_7 = arith.constant 0.000000e+00 : f32
    %7 = vector.broadcast %cst_7 : f32 to vector<8x32xf32>
    %cst_8 = arith.constant 0.000000e+00 : f32
    %8 = vector.broadcast %cst_8 : f32 to vector<8x32xf32>
    %9 = vector.extract_strided_slice %6 {offsets = [0, 0], sizes = [8, 128], strides = [1, 1]} : vector<64x128xf32> to vector<8x128xf32>
    %cst_9 = arith.constant dense<0.000000e+00> : vector<8x128xf32>
    %10 = tpu.matmul %7, %0, %cst_9 {dimension_numbers = #tpu.dot_dimension_numbers<[1], [0], [0], [1], [0, 0, 1, 1], [], []>} : vector<8x32xf32>, vector<32x128xf32>, vector<8x128xf32> -> vector<8x128xf32>
    %11 = arith.addf %9, %10 : vector<8x128xf32>
    %12 = arith.negf %11 : vector<8x128xf32>
    %13 = math.exp %12 : vector<8x128xf32>
    %cst_10 = arith.constant 1.000000e+00 : f32
    %14 = vector.broadcast %cst_10 : f32 to vector<8x128xf32>
    %15 = arith.addf %14, %13 : vector<8x128xf32>
    %16 = arith.divf %14, %15 : vector<8x128xf32>
    %17 = math.tanh %11 : vector<8x128xf32>
    %18 = vector.extract_strided_slice %16 {offsets = [0, 0], sizes = [8, 32], strides = [1, 1]} : vector<8x128xf32> to vector<8x32xf32>
    %19 = vector.extract_strided_slice %16 {offsets = [0, 32], sizes = [8, 32], strides = [1, 1]} : vector<8x128xf32> to vector<8x32xf32>
    %20 = vector.extract_strided_slice %17 {offsets = [0, 64], sizes = [8, 32], strides = [1, 1]} : vector<8x128xf32> to vector<8x32xf32>
    %21 = vector.extract_strided_slice %16 {offsets = [0, 96], sizes = [8, 32], strides = [1, 1]} : vector<8x128xf32> to vector<8x32xf32>
    %22 = arith.mulf %19, %8 : vector<8x32xf32>
    %23 = arith.mulf %18, %20 : vector<8x32xf32>
    %24 = arith.addf %22, %23 : vector<8x32xf32>
    %25 = math.tanh %24 : vector<8x32xf32>
    %26 = arith.mulf %21, %25 : vector<8x32xf32>
    %27 = vector.extract_strided_slice %6 {offsets = [8, 0], sizes = [8, 128], strides = [1, 1]} : vector<64x128xf32> to vector<8x128xf32>
    %cst_11 = arith.constant dense<0.000000e+00> : vector<8x128xf32>
    %28 = tpu.matmul %26, %0, %cst_11 {dimension_numbers = #tpu.dot_dimension_numbers<[1], [0], [0], [1], [0, 0, 1, 1], [], []>} : vector<8x32xf32>, vector<32x128xf32>, vector<8x128xf32> -> vector<8x128xf32>
    %29 = arith.addf %27, %28 : vector<8x128xf32>
    %30 = arith.negf %29 : vector<8x128xf32>
    %31 = math.exp %30 : vector<8x128xf32>
    %cst_12 = arith.constant 1.000000e+00 : f32
    %32 = vector.broadcast %cst_12 : f32 to vector<8x128xf32>
    %33 = arith.addf %32, %31 : vector<8x128xf32>
    %34 = arith.divf %32, %33 : vector<8x128xf32>
    %35 = math.tanh %29 : vector<8x128xf32>
    %36 = vector.extract_strided_slice %34 {offsets = [0, 0], sizes = [8, 32], strides = [1, 1]} : vector<8x128xf32> to vector<8x32xf32>
    %37 = vector.extract_strided_slice %34 {offsets = [0, 32], sizes = [8, 32], strides = [1, 1]} : vector<8x128xf32> to vector<8x32xf32>
    %38 = vector.extract_strided_slice %35 {offsets = [0, 64], sizes = [8, 32], strides = [1, 1]} : vector<8x128xf32> to vector<8x32xf32>
    %39 = vector.extract_strided_slice %34 {offsets = [0, 96], sizes = [8, 32], strides = [1, 1]} : vector<8x128xf32> to vector<8x32xf32>
    %40 = arith.mulf %37, %24 : vector<8x32xf32>
    %41 = arith.mulf %36, %38 : vector<8x32xf32>
    %42 = arith.addf %40, %41 : vector<8x32xf32>
    %43 = math.tanh %42 : vector<8x32xf32>
    %44 = arith.mulf %39, %43 : vector<8x32xf32>
    %45 = vector.extract_strided_slice %6 {offsets = [16, 0], sizes = [8, 128], strides = [1, 1]} : vector<64x128xf32> to vector<8x128xf32>
    %cst_13 = arith.constant dense<0.000000e+00> : vector<8x128xf32>
    %46 = tpu.matmul %44, %0, %cst_13 {dimension_numbers = #tpu.dot_dimension_numbers<[1], [0], [0], [1], [0, 0, 1, 1], [], []>} : vector<8x32xf32>, vector<32x128xf32>, vector<8x128xf32> -> vector<8x128xf32>
    %47 = arith.addf %45, %46 : vector<8x128xf32>
    %48 = arith.negf %47 : vector<8x128xf32>
    %49 = math.exp %48 : vector<8x128xf32>
    %cst_14 = arith.constant 1.000000e+00 : f32
    %50 = vector.broadcast %cst_14 : f32 to vector<8x128xf32>
    %51 = arith.addf %50, %49 : vector<8x128xf32>
    %52 = arith.divf %50, %51 : vector<8x128xf32>
    %53 = math.tanh %47 : vector<8x128xf32>
    %54 = vector.extract_strided_slice %52 {offsets = [0, 0], sizes = [8, 32], strides = [1, 1]} : vector<8x128xf32> to vector<8x32xf32>
    %55 = vector.extract_strided_slice %52 {offsets = [0, 32], sizes = [8, 32], strides = [1, 1]} : vector<8x128xf32> to vector<8x32xf32>
    %56 = vector.extract_strided_slice %53 {offsets = [0, 64], sizes = [8, 32], strides = [1, 1]} : vector<8x128xf32> to vector<8x32xf32>
    %57 = vector.extract_strided_slice %52 {offsets = [0, 96], sizes = [8, 32], strides = [1, 1]} : vector<8x128xf32> to vector<8x32xf32>
    %58 = arith.mulf %55, %42 : vector<8x32xf32>
    %59 = arith.mulf %54, %56 : vector<8x32xf32>
    %60 = arith.addf %58, %59 : vector<8x32xf32>
    %61 = math.tanh %60 : vector<8x32xf32>
    %62 = arith.mulf %57, %61 : vector<8x32xf32>
    %63 = vector.extract_strided_slice %6 {offsets = [24, 0], sizes = [8, 128], strides = [1, 1]} : vector<64x128xf32> to vector<8x128xf32>
    %cst_15 = arith.constant dense<0.000000e+00> : vector<8x128xf32>
    %64 = tpu.matmul %62, %0, %cst_15 {dimension_numbers = #tpu.dot_dimension_numbers<[1], [0], [0], [1], [0, 0, 1, 1], [], []>} : vector<8x32xf32>, vector<32x128xf32>, vector<8x128xf32> -> vector<8x128xf32>
    %65 = arith.addf %63, %64 : vector<8x128xf32>
    %66 = arith.negf %65 : vector<8x128xf32>
    %67 = math.exp %66 : vector<8x128xf32>
    %cst_16 = arith.constant 1.000000e+00 : f32
    %68 = vector.broadcast %cst_16 : f32 to vector<8x128xf32>
    %69 = arith.addf %68, %67 : vector<8x128xf32>
    %70 = arith.divf %68, %69 : vector<8x128xf32>
    %71 = math.tanh %65 : vector<8x128xf32>
    %72 = vector.extract_strided_slice %70 {offsets = [0, 0], sizes = [8, 32], strides = [1, 1]} : vector<8x128xf32> to vector<8x32xf32>
    %73 = vector.extract_strided_slice %70 {offsets = [0, 32], sizes = [8, 32], strides = [1, 1]} : vector<8x128xf32> to vector<8x32xf32>
    %74 = vector.extract_strided_slice %71 {offsets = [0, 64], sizes = [8, 32], strides = [1, 1]} : vector<8x128xf32> to vector<8x32xf32>
    %75 = vector.extract_strided_slice %70 {offsets = [0, 96], sizes = [8, 32], strides = [1, 1]} : vector<8x128xf32> to vector<8x32xf32>
    %76 = arith.mulf %73, %60 : vector<8x32xf32>
    %77 = arith.mulf %72, %74 : vector<8x32xf32>
    %78 = arith.addf %76, %77 : vector<8x32xf32>
    %79 = math.tanh %78 : vector<8x32xf32>
    %80 = arith.mulf %75, %79 : vector<8x32xf32>
    %81 = vector.extract_strided_slice %6 {offsets = [32, 0], sizes = [8, 128], strides = [1, 1]} : vector<64x128xf32> to vector<8x128xf32>
    %cst_17 = arith.constant dense<0.000000e+00> : vector<8x128xf32>
    %82 = tpu.matmul %80, %0, %cst_17 {dimension_numbers = #tpu.dot_dimension_numbers<[1], [0], [0], [1], [0, 0, 1, 1], [], []>} : vector<8x32xf32>, vector<32x128xf32>, vector<8x128xf32> -> vector<8x128xf32>
    %83 = arith.addf %81, %82 : vector<8x128xf32>
    %84 = arith.negf %83 : vector<8x128xf32>
    %85 = math.exp %84 : vector<8x128xf32>
    %cst_18 = arith.constant 1.000000e+00 : f32
    %86 = vector.broadcast %cst_18 : f32 to vector<8x128xf32>
    %87 = arith.addf %86, %85 : vector<8x128xf32>
    %88 = arith.divf %86, %87 : vector<8x128xf32>
    %89 = math.tanh %83 : vector<8x128xf32>
    %90 = vector.extract_strided_slice %88 {offsets = [0, 0], sizes = [8, 32], strides = [1, 1]} : vector<8x128xf32> to vector<8x32xf32>
    %91 = vector.extract_strided_slice %88 {offsets = [0, 32], sizes = [8, 32], strides = [1, 1]} : vector<8x128xf32> to vector<8x32xf32>
    %92 = vector.extract_strided_slice %89 {offsets = [0, 64], sizes = [8, 32], strides = [1, 1]} : vector<8x128xf32> to vector<8x32xf32>
    %93 = vector.extract_strided_slice %88 {offsets = [0, 96], sizes = [8, 32], strides = [1, 1]} : vector<8x128xf32> to vector<8x32xf32>
    %94 = arith.mulf %91, %78 : vector<8x32xf32>
    %95 = arith.mulf %90, %92 : vector<8x32xf32>
    %96 = arith.addf %94, %95 : vector<8x32xf32>
    %97 = math.tanh %96 : vector<8x32xf32>
    %98 = arith.mulf %93, %97 : vector<8x32xf32>
    %99 = vector.extract_strided_slice %6 {offsets = [40, 0], sizes = [8, 128], strides = [1, 1]} : vector<64x128xf32> to vector<8x128xf32>
    %cst_19 = arith.constant dense<0.000000e+00> : vector<8x128xf32>
    %100 = tpu.matmul %98, %0, %cst_19 {dimension_numbers = #tpu.dot_dimension_numbers<[1], [0], [0], [1], [0, 0, 1, 1], [], []>} : vector<8x32xf32>, vector<32x128xf32>, vector<8x128xf32> -> vector<8x128xf32>
    %101 = arith.addf %99, %100 : vector<8x128xf32>
    %102 = arith.negf %101 : vector<8x128xf32>
    %103 = math.exp %102 : vector<8x128xf32>
    %cst_20 = arith.constant 1.000000e+00 : f32
    %104 = vector.broadcast %cst_20 : f32 to vector<8x128xf32>
    %105 = arith.addf %104, %103 : vector<8x128xf32>
    %106 = arith.divf %104, %105 : vector<8x128xf32>
    %107 = math.tanh %101 : vector<8x128xf32>
    %108 = vector.extract_strided_slice %106 {offsets = [0, 0], sizes = [8, 32], strides = [1, 1]} : vector<8x128xf32> to vector<8x32xf32>
    %109 = vector.extract_strided_slice %106 {offsets = [0, 32], sizes = [8, 32], strides = [1, 1]} : vector<8x128xf32> to vector<8x32xf32>
    %110 = vector.extract_strided_slice %107 {offsets = [0, 64], sizes = [8, 32], strides = [1, 1]} : vector<8x128xf32> to vector<8x32xf32>
    %111 = vector.extract_strided_slice %106 {offsets = [0, 96], sizes = [8, 32], strides = [1, 1]} : vector<8x128xf32> to vector<8x32xf32>
    %112 = arith.mulf %109, %96 : vector<8x32xf32>
    %113 = arith.mulf %108, %110 : vector<8x32xf32>
    %114 = arith.addf %112, %113 : vector<8x32xf32>
    %115 = math.tanh %114 : vector<8x32xf32>
    %116 = arith.mulf %111, %115 : vector<8x32xf32>
    %117 = vector.extract_strided_slice %6 {offsets = [48, 0], sizes = [8, 128], strides = [1, 1]} : vector<64x128xf32> to vector<8x128xf32>
    %cst_21 = arith.constant dense<0.000000e+00> : vector<8x128xf32>
    %118 = tpu.matmul %116, %0, %cst_21 {dimension_numbers = #tpu.dot_dimension_numbers<[1], [0], [0], [1], [0, 0, 1, 1], [], []>} : vector<8x32xf32>, vector<32x128xf32>, vector<8x128xf32> -> vector<8x128xf32>
    %119 = arith.addf %117, %118 : vector<8x128xf32>
    %120 = arith.negf %119 : vector<8x128xf32>
    %121 = math.exp %120 : vector<8x128xf32>
    %cst_22 = arith.constant 1.000000e+00 : f32
    %122 = vector.broadcast %cst_22 : f32 to vector<8x128xf32>
    %123 = arith.addf %122, %121 : vector<8x128xf32>
    %124 = arith.divf %122, %123 : vector<8x128xf32>
    %125 = math.tanh %119 : vector<8x128xf32>
    %126 = vector.extract_strided_slice %124 {offsets = [0, 0], sizes = [8, 32], strides = [1, 1]} : vector<8x128xf32> to vector<8x32xf32>
    %127 = vector.extract_strided_slice %124 {offsets = [0, 32], sizes = [8, 32], strides = [1, 1]} : vector<8x128xf32> to vector<8x32xf32>
    %128 = vector.extract_strided_slice %125 {offsets = [0, 64], sizes = [8, 32], strides = [1, 1]} : vector<8x128xf32> to vector<8x32xf32>
    %129 = vector.extract_strided_slice %124 {offsets = [0, 96], sizes = [8, 32], strides = [1, 1]} : vector<8x128xf32> to vector<8x32xf32>
    %130 = arith.mulf %127, %114 : vector<8x32xf32>
    %131 = arith.mulf %126, %128 : vector<8x32xf32>
    %132 = arith.addf %130, %131 : vector<8x32xf32>
    %133 = math.tanh %132 : vector<8x32xf32>
    %134 = arith.mulf %129, %133 : vector<8x32xf32>
    %135 = vector.extract_strided_slice %6 {offsets = [56, 0], sizes = [8, 128], strides = [1, 1]} : vector<64x128xf32> to vector<8x128xf32>
    %cst_23 = arith.constant dense<0.000000e+00> : vector<8x128xf32>
    %136 = tpu.matmul %134, %0, %cst_23 {dimension_numbers = #tpu.dot_dimension_numbers<[1], [0], [0], [1], [0, 0, 1, 1], [], []>} : vector<8x32xf32>, vector<32x128xf32>, vector<8x128xf32> -> vector<8x128xf32>
    %137 = arith.addf %135, %136 : vector<8x128xf32>
    %138 = arith.negf %137 : vector<8x128xf32>
    %139 = math.exp %138 : vector<8x128xf32>
    %cst_24 = arith.constant 1.000000e+00 : f32
    %140 = vector.broadcast %cst_24 : f32 to vector<8x128xf32>
    %141 = arith.addf %140, %139 : vector<8x128xf32>
    %142 = arith.divf %140, %141 : vector<8x128xf32>
    %143 = math.tanh %137 : vector<8x128xf32>
    %144 = vector.extract_strided_slice %142 {offsets = [0, 0], sizes = [8, 32], strides = [1, 1]} : vector<8x128xf32> to vector<8x32xf32>
    %145 = vector.extract_strided_slice %142 {offsets = [0, 32], sizes = [8, 32], strides = [1, 1]} : vector<8x128xf32> to vector<8x32xf32>
    %146 = vector.extract_strided_slice %143 {offsets = [0, 64], sizes = [8, 32], strides = [1, 1]} : vector<8x128xf32> to vector<8x32xf32>
    %147 = vector.extract_strided_slice %142 {offsets = [0, 96], sizes = [8, 32], strides = [1, 1]} : vector<8x128xf32> to vector<8x32xf32>
    %148 = arith.mulf %145, %132 : vector<8x32xf32>
    %149 = arith.mulf %144, %146 : vector<8x32xf32>
    %150 = arith.addf %148, %149 : vector<8x32xf32>
    %151 = math.tanh %150 : vector<8x32xf32>
    %152 = arith.mulf %147, %151 : vector<8x32xf32>
    %c0_25 = arith.constant 0 : index
    %c0_26 = arith.constant 0 : index
    %153 = vector.load %arg4[%c0_25, %c0_26] : memref<32x8xf32, #tpu.memory_space<vmem>>, vector<32x8xf32>
    %cst_27 = arith.constant dense<0.000000e+00> : vector<8x8xf32>
    %154 = tpu.matmul %152, %153, %cst_27 {dimension_numbers = #tpu.dot_dimension_numbers<[1], [0], [0], [1], [0, 0, 1, 1], [], []>} : vector<8x32xf32>, vector<32x8xf32>, vector<8x8xf32> -> vector<8x8xf32>
    %c0_28 = arith.constant 0 : index
    %c0_29 = arith.constant 0 : index
    %155 = vector.load %arg5[%c0_28, %c0_29] : memref<1x8xf32, #tpu.memory_space<vmem>>, vector<1x8xf32>
    %156 = vector.broadcast %155 : vector<1x8xf32> to vector<8x8xf32>
    %157 = arith.addf %154, %156 : vector<8x8xf32>
    %c0_30 = arith.constant 0 : index
    %c0_31 = arith.constant 0 : index
    %158 = vector.load %arg6[%c0_30, %c0_31] : memref<8x8xf32, #tpu.memory_space<vmem>>, vector<8x8xf32>
    tpu.vector_store %arg6[%c0_30, %c0_31], %157 {strides = array<i32>} : memref<8x8xf32, #tpu.memory_space<vmem>>, vector<8x8xf32>,
    return
  }
}

</mosaic_0001>

<bundles_post_ra>
// kernel: tpu_custom_call.1
= control target key start
LH: loop header
LB: loop body
LE: loop exit
PB: predicated region body
PF: predicated region fallthrough
CT: control target
= control target key end

     0   :  { %vm45_vm0 = vcmask 130048   ;;  %v1424_v3 = vmov 0.0|0.0   ;;  %vm1425_vm1 = vmmov 0   ;;  %v1426_v10 = vmov 0.0   ;;  %s1664_s0 = inlined_call_operand.vmem [shape: f32[64,16], index: 0, kind: input, shape index: {}]   ;;  %s1665_s1 = inlined_call_operand.vmem [shape: f32[16,128], index: 1, kind: input, shape index: {}]   ;;  %s1666_s2 = inlined_call_operand.vmem [shape: f32[32,128], index: 2, kind: input, shape index: {}]   ;;  %s1667_s3 = inlined_call_operand.vmem [shape: f32[1,128], index: 3, kind: input, shape index: {}]   ;;  %s1668_s4 = inlined_call_operand.vmem [shape: f32[32,8], index: 4, kind: input, shape index: {}]   ;;  %s1669_s5 = inlined_call_operand.vmem [shape: f32[1,8], index: 5, kind: input, shape index: {}]   ;;  %s1670_s6 = inlined_call_operand.hbm [shape: f32[8,8], index: 6, kind: output, shape index: {}]  }
   0x1   :  { %v36_v0 = vld [vmem:[%s1665_s1] sm:$0xff]  ;;  %v37_v1 = vld [vmem:[%s1665_s1 + $0x8] sm:$0xff]  ;;  %1276 = vmatprep.subr.bf16.mxu1 %v1424_v3  ;;  %v26_v8 = vld [vmem:[%s1666_s2 + $0x10] sm:$0xff]  ;;  %1181 = vmatprep.mubr.msk.f32.mxu1 %vm1425_vm1, %v1426_v10 }
   0x2   :  { %v24_v2 = vld [vmem:[%s1666_s2] sm:$0xff]  ;;  %v1272_v4 = vpack.c.bf16 %v37_v1, %v36_v0  ;;  %v25_v5 = vld [vmem:[%s1666_s2 + $0x8] sm:$0xff]  ;;  %v27_v9 = vld [vmem:[%s1666_s2 + $0x18] sm:$0xff] }
   0x3   :  { %v28_v6 = vld [vmem:[%s1664_s0] sm:$0xff]  ;;  %v1481_v7 = vpack.c.bf16 %v25_v5, %v24_v2 }
   0x4   :  { %1161 = vmatprep.mubr.msk.f32.mxu0 %vm45_vm0, %v28_v6 }
   0x5   :  { %11 = vsyncpa [#allocation3], 0  ;;  %1273 = vmatprep.subr.bf16.mxu0 %v1272_v4  ;;  %1278 = vmatpush3.bf16.msra.mxu1 %v1481_v7  ;;  %v29_v11 = vld [vmem:[%s1664_s0 + $0x8] sm:$0xff]  ;;  %v1496_v12 = vpack.c.bf16 %v27_v9, %v26_v8  ;;  %v1517_v13 = vld [vmem:[%s1667_s3] ss:$0 sm:$0xff]  ;;  %s1427_s13 = smov 64  }
   0x6   :  { %1275 = vmatpush3.bf16.msra.mxu0 %v1272_v4  ;;  %1279 = vmatprep.subr.bf16.mxu1 %v1424_v3  ;;  %s1428_s3 = smov 32   ;;  %vm175_vm2 = vcmask 261120   ;;  %v30_v48 = vld [vmem:[%s1664_s0 + $0x10] sm:$0xff]  ;;  %v31_v49 = vld [vmem:[%s1664_s0 + $0x18] sm:$0xff]  ;;  %v32_v50 = vld [vmem:[%s1664_s0 + $0x20] sm:$0xff]  ;;  %vm1060_vm3 = vcmask 64512  }
   0x7   :  { %1288 = vmatprep.subr.bf16.mxu0 %v1424_v3  ;;  %v33_v51 = vld [vmem:[%s1664_s0 + $0x28] sm:$0xff]  ;;  %v34_v52 = vld [vmem:[%s1664_s0 + $0x30] sm:$0xff]  ;;  %v35_v53 = vld [vmem:[%s1664_s0 + $0x38] sm:$0xff] }
   0x9   :  { %1162 = vmatmul.mubr.msk.f32.vlgmr.msra.gmra.mrb[0].mxu0 %vm45_vm0, %v29_v11  ;;  %1281 = vmatpush3.bf16.msra.mxu1 %v1496_v12 }
   0xa   :  { %1290 = vmatpush3.bf16.msra.mxu0 %v1481_v7  ;;  %1282 = vmatprep.subr.bf16.mxu1 %v1424_v3 }
   0xb   :  { %1291 = vmatprep.subr.bf16.mxu0 %v1424_v3  ;;  %1164 = vmatprep.mubr.msk.f32.mxu0 %vm45_vm0, %v30_v48 }
   0xc   :  { %1182 = vmatmul.mubr.f32.vlgmr.msra.gmra.mrb[0].mxu1 %v1426_v10 }
   0xd   :  { %1284 = vmatpush3.bf16.msra.mxu1 %v1481_v7  ;;  %1192 = vmatprep.mubr.msk.f32.mxu1 %vm1425_vm1, %v1426_v10 }
   0xe   :  { %1285 = vmatprep.subr.bf16.mxu1 %v1424_v3  ;;  %1293 = vmatpush3.bf16.msra.mxu0 %v1496_v12 }
   0xf   :  { %1300 = vmatprep.subr.bf16.mxu0 %v1424_v3  ;;  %1165 = vmatmul.mubr.msk.f32.gmra.mrb[2].mxu0 %vm45_vm0, %v31_v49 }
  0x10   :  { %1167 = vmatprep.mubr.msk.f32.mxu0 %vm45_vm0, %v32_v50 }
  0x11   :  { %1287 = vmatpush3.bf16.msra.mxu1 %v1496_v12 }
  0x12   :  { %1294 = vmatprep.subr.bf16.mxu1 %v1424_v3 }
  0x13   :  { %1168 = vmatmul.mubr.msk.f32.gmra.mrb[4].mxu0 %vm45_vm0, %v33_v51 }
  0x14   :  { %1170 = vmatprep.mubr.msk.f32.mxu0 %vm45_vm0, %v34_v52 }
  0x17   :  { %1171 = vmatmul.mubr.msk.f32.gmra.mrb[6].mxu0 %vm45_vm0, %v35_v53 }
  0x18   :  { %1203 = vmatprep.mubr.msk.f32.mxu0 %vm1425_vm1, %v1426_v10 }
  0xdc   :  { %v1163_v14 = vpop.f32.mrb[0].mxu0 }
  0xdd   :  { %v136_v15 = vpop.f32.mrb[1].mxu0  ;;  %v142_v34 = vadd.f32 %v1163_v14, %v1517_v13 }
  0xde   :  { %v137_v16 = vadd.f32 %v1517_v13, %v136_v15 }
  0xdf   :  { %v245_v17 = vpop.f32.mrb[0].mxu1 }
  0xe0   :  { %v249_v18 = vadd.f32 %v245_v17, %v137_v16  ;;  %v1183_v19 = vpop.f32.mrb[1].mxu1 }
  0xe2   :  { %1336 = vtanh.f32 %v249_v18  ;;  %v1085_v21 = vmul.f32 -1.442695, %v249_v18  ;;  %v1166_v57 = vpop.f32.mrb[2].mxu0 }
  0xe3   :  { %v146_v58 = vpop.f32.mrb[3].mxu0 }
  0xe4   :  { %1338 = vpow2.f32 %v1085_v21  ;;  %v147_v0 = vadd.f32 %v1517_v13, %v146_v58 }
  0xe6   :  { %v1562_v59 = vpop.f32.mrb[4].mxu0 }
  0xe7   :  { %v1564_v60 = vpop.f32.mrb[5].mxu0 }
  0xea   :  { %v1566_v61 = vpop.f32.mrb[6].mxu0 }
  0xeb   :  { %v1568_v62 = vpop.f32.mrb[7].mxu0 }
  0xec   :  { %v1337_v20 = vpop.eup %1336 }
  0xed   :  { %259 = vrot.lane.b32.xlu0 %v1337_v20, %s1427_s13 }
  0xee   :  { %v1339_v22 = vpop.eup %1338 }
  0xef   :  { %v253_v23 = vadd.f32 1.0, %v1339_v22 }
  0xf1   :  { %1340 = vrcp.f32 %v253_v23  ;;  %v152_v23 = vadd.f32 %v1166_v57, %v1517_v13 }
  0xfb   :  { %v1341_v24 = vpop.eup %1340 }
  0xfc   :  { %v257_v27 = vmul.f32 0.0, %v1341_v24 }
 0x15f   :  { %v260_v25 = vpop.permute.xlu0 %259 }
 0x160   :  { %v262_v26 = vmul.f32 %v1341_v24, %v260_v25 }
 0x162   :  { %264 = vrot.lane.b32.xlu0 %v262_v26, %s1428_s3 }
 0x1d4   :  { %v265_v28 = vpop.permute.xlu0 %264 }
 0x1d5   :  { %v267_v29 = vadd.f32 %v265_v28, %v257_v27 }
 0x1d7   :  { %1342 = vtanh.f32 %v267_v29 }
 0x1e1   :  { %v1343_v30 = vpop.eup %1342 }
 0x1e2   :  { %270 = vrot.lane.b32.xlu1 %v1343_v30, %s1427_s13 }
 0x254   :  { %v271_v31 = vpop.permute.xlu1 %270 }
 0x255   :  { %v273_v32 = vmul.f32 %v1341_v24, %v271_v31 }
 0x257   :  { %275 = vrot.lane.b32.xlu1 %v273_v32, %s1428_s3 }
 0x2c9   :  { %v276_v33 = vpop.permute.xlu1 %275 }
 0x2ca   :  { %1193 = vmatmul.mubr.msk.f32.vlgmr.msra.gmra.mrb[2].mxu1 %vm175_vm2, %v276_v33 }
 0x2cb   :  { %1296 = vmatpush3.bf16.msra.mxu1 %v1481_v7  ;;  %1214 = vmatprep.mubr.msk.f32.mxu1 %vm1425_vm1, %v1426_v10 }
 0x2cc   :  { %1297 = vmatprep.subr.bf16.mxu1 %v1424_v3 }
 0x2cf   :  { %1299 = vmatpush3.bf16.msra.mxu1 %v1496_v12 }
 0x2d0   :  { %1306 = vmatprep.subr.bf16.mxu1 %v1424_v3 }
 0x39d   :  { %v345_v35 = vpop.f32.mrb[2].mxu1 }
 0x39e   :  { %v349_v36 = vadd.f32 %v345_v35, %v142_v34  ;;  %v1194_v37 = vpop.f32.mrb[3].mxu1 }
 0x3a0   :  { %1344 = vtanh.f32 %v349_v36  ;;  %v1087_v39 = vmul.f32 -1.442695, %v349_v36 }
 0x3a2   :  { %1346 = vpow2.f32 %v1087_v39 }
 0x3aa   :  { %v1345_v38 = vpop.eup %1344 }
 0x3ab   :  { %359 = vrot.lane.b32.xlu0 %v1345_v38, %s1427_s13 }
 0x3ac   :  { %v1347_v40 = vpop.eup %1346 }
 0x3ad   :  { %v353_v41 = vadd.f32 1.0, %v1347_v40 }
 0x3af   :  { %1348 = vrcp.f32 %v353_v41  ;;  %v157_v41 = vadd.f32 %v1517_v13, %v1564_v60  ;;  %v162_v60 = vadd.f32 %v1562_v59, %v1517_v13 }
 0x3b9   :  { %v1349_v42 = vpop.eup %1348 }
 0x3ba   :  { %v357_v45 = vmul.f32 %v1349_v42, %v267_v29 }
 0x41d   :  { %v360_v43 = vpop.permute.xlu0 %359 }
 0x41e   :  { %v362_v44 = vmul.f32 %v1349_v42, %v360_v43 }
 0x420   :  { %364 = vrot.lane.b32.xlu1 %v362_v44, %s1428_s3 }
 0x492   :  { %v365_v46 = vpop.permute.xlu1 %364 }
 0x493   :  { %v367_v47 = vadd.f32 %v365_v46, %v357_v45 }
 0x495   :  { %1350 = vtanh.f32 %v367_v47 }
 0x49f   :  { %v1351_v54 = vpop.eup %1350 }
 0x4a0   :  { %370 = vrot.lane.b32.xlu0 %v1351_v54, %s1427_s13 }
 0x512   :  { %v371_v55 = vpop.permute.xlu0 %370 }
 0x513   :  { %v373_v56 = vmul.f32 %v1349_v42, %v371_v55 }
 0x515   :  { %375 = vrot.lane.b32.xlu1 %v373_v56, %s1428_s3 }
 0x587   :  { %v376_v63 = vpop.permute.xlu1 %375 }
 0x588   :  { %1204 = vmatmul.mubr.msk.f32.vlgmr.msra.gmra.mrb[8].mxu0 %vm175_vm2, %v376_v63 }
 0x589   :  { %1302 = vmatpush3.bf16.msra.mxu0 %v1481_v7  ;;  %1225 = vmatprep.mubr.msk.f32.mxu0 %vm1425_vm1, %v1426_v10 }
 0x58a   :  { %1303 = vmatprep.subr.bf16.mxu0 %v1424_v3 }
 0x58d   :  { %1305 = vmatpush3.bf16.msra.mxu0 %v1496_v12 }
 0x58e   :  { %1312 = vmatprep.subr.bf16.mxu0 %v1424_v3 }
 0x65b   :  { %v445_v1 = vpop.f32.mrb[8].mxu0 }
 0x65c   :  { %v449_v2 = vadd.f32 %v445_v1, %v147_v0  ;;  %v1205_v4 = vpop.f32.mrb[9].mxu0 }
 0x65e   :  { %1352 = vtanh.f32 %v449_v2  ;;  %v1089_v6 = vmul.f32 -1.442695, %v449_v2 }
 0x660   :  { %1354 = vpow2.f32 %v1089_v6 }
 0x668   :  { %v1353_v5 = vpop.eup %1352 }
 0x669   :  { %459 = vrot.lane.b32.xlu0 %v1353_v5, %s1427_s13 }
 0x66a   :  { %v1355_v8 = vpop.eup %1354 }
 0x66b   :  { %v453_v9 = vadd.f32 1.0, %v1355_v8 }
 0x66d   :  { %1356 = vrcp.f32 %v453_v9 }
 0x677   :  { %v1357_v11 = vpop.eup %1356 }
 0x678   :  { %v457_v16 = vmul.f32 %v1357_v11, %v367_v47 }
 0x6db   :  { %v460_v14 = vpop.permute.xlu0 %459 }
 0x6dc   :  { %v462_v15 = vmul.f32 %v1357_v11, %v460_v14 }
 0x6de   :  { %464 = vrot.lane.b32.xlu1 %v462_v15, %s1428_s3 }
 0x750   :  { %v465_v17 = vpop.permute.xlu1 %464 }
 0x751   :  { %v467_v18 = vadd.f32 %v465_v17, %v457_v16 }
 0x753   :  { %1358 = vtanh.f32 %v467_v18 }
 0x75d   :  { %v1359_v19 = vpop.eup %1358 }
 0x75e   :  { %470 = vrot.lane.b32.xlu0 %v1359_v19, %s1427_s13 }
 0x7d0   :  { %v471_v20 = vpop.permute.xlu0 %470 }
 0x7d1   :  { %v473_v21 = vmul.f32 %v1357_v11, %v471_v20 }
 0x7d3   :  { %475 = vrot.lane.b32.xlu1 %v473_v21, %s1428_s3 }
 0x845   :  { %v476_v22 = vpop.permute.xlu1 %475 }
 0x846   :  { %1215 = vmatmul.mubr.msk.f32.vlgmr.msra.gmra.mrb[4].mxu1 %vm175_vm2, %v476_v22 }
 0x847   :  { %1308 = vmatpush3.bf16.msra.mxu1 %v1481_v7  ;;  %1236 = vmatprep.mubr.msk.f32.mxu1 %vm1425_vm1, %v1426_v10 }
 0x848   :  { %1309 = vmatprep.subr.bf16.mxu1 %v1424_v3 }
 0x84b   :  { %1311 = vmatpush3.bf16.msra.mxu1 %v1496_v12 }
 0x84c   :  { %1318 = vmatprep.subr.bf16.mxu1 %v1424_v3 }
 0x919   :  { %v545_v24 = vpop.f32.mrb[4].mxu1 }
 0x91a   :  { %v549_v25 = vadd.f32 %v545_v24, %v152_v23  ;;  %v1216_v26 = vpop.f32.mrb[5].mxu1 }
 0x91c   :  { %1360 = vtanh.f32 %v549_v25  ;;  %v1091_v28 = vmul.f32 -1.442695, %v549_v25 }
 0x91e   :  { %1362 = vpow2.f32 %v1091_v28 }
 0x926   :  { %v1361_v27 = vpop.eup %1360 }
 0x927   :  { %559 = vrot.lane.b32.xlu0 %v1361_v27, %s1427_s13 }
 0x928   :  { %v1363_v29 = vpop.eup %1362 }
 0x929   :  { %v553_v30 = vadd.f32 1.0, %v1363_v29 }
 0x92b   :  { %1364 = vrcp.f32 %v553_v30 }
 0x935   :  { %v1365_v31 = vpop.eup %1364 }
 0x936   :  { %v557_v34 = vmul.f32 %v1365_v31, %v467_v18  ;;  %v167_v18 = vadd.f32 %v1517_v13, %v1568_v62 }
 0x999   :  { %v560_v32 = vpop.permute.xlu0 %559 }
 0x99a   :  { %v562_v33 = vmul.f32 %v1365_v31, %v560_v32 }
 0x99c   :  { %564 = vrot.lane.b32.xlu1 %v562_v33, %s1428_s3 }
 0xa0e   :  { %v565_v35 = vpop.permute.xlu1 %564 }
 0xa0f   :  { %v567_v36 = vadd.f32 %v565_v35, %v557_v34  ;;  %v172_v34 = vadd.f32 %v1566_v61, %v1517_v13  ;;  %v974_v61 = vld [vmem:[%s1668_s4] sm:$0xff] }
 0xa11   :  { %1366 = vtanh.f32 %v567_v36 }
 0xa1b   :  { %v1367_v37 = vpop.eup %1366 }
 0xa1c   :  { %570 = vrot.lane.b32.xlu0 %v1367_v37, %s1427_s13 }
 0xa8e   :  { %v571_v38 = vpop.permute.xlu0 %570 }
 0xa8f   :  { %v573_v39 = vmul.f32 %v1365_v31, %v571_v38 }
 0xa91   :  { %575 = vrot.lane.b32.xlu1 %v573_v39, %s1428_s3 }
 0xb03   :  { %v576_v40 = vpop.permute.xlu1 %575 }
 0xb04   :  { %1226 = vmatmul.mubr.msk.f32.vlgmr.msra.gmra.mrb[10].mxu0 %vm175_vm2, %v576_v40 }
 0xb05   :  { %1314 = vmatpush3.bf16.msra.mxu0 %v1481_v7  ;;  %1247 = vmatprep.mubr.msk.f32.mxu0 %vm1425_vm1, %v1426_v10 }
 0xb06   :  { %1315 = vmatprep.subr.bf16.mxu0 %v1424_v3 }
 0xb09   :  { %1317 = vmatpush3.bf16.msra.mxu0 %v1496_v12 }
 0xb0a   :  { %1324 = vmatprep.subr.bf16.mxu0 %v1424_v3 }
 0xbd7   :  { %v645_v42 = vpop.f32.mrb[10].mxu0 }
 0xbd8   :  { %v649_v43 = vadd.f32 %v645_v42, %v157_v41  ;;  %v1227_v44 = vpop.f32.mrb[11].mxu0 }
 0xbda   :  { %1368 = vtanh.f32 %v649_v43  ;;  %v1093_v46 = vmul.f32 -1.442695, %v649_v43 }
 0xbdc   :  { %1370 = vpow2.f32 %v1093_v46 }
 0xbe4   :  { %v1369_v45 = vpop.eup %1368 }
 0xbe5   :  { %659 = vrot.lane.b32.xlu0 %v1369_v45, %s1427_s13 }
 0xbe6   :  { %v1371_v47 = vpop.eup %1370 }
 0xbe7   :  { %v653_v48 = vadd.f32 1.0, %v1371_v47  ;;  %v975_v47 = vld [vmem:[%s1668_s4 + $0x8] sm:$0xff] }
 0xbe9   :  { %1372 = vrcp.f32 %v653_v48  ;;  %v976_v48 = vld [vmem:[%s1668_s4 + $0x10] sm:$0xff] }
 0xbf3   :  { %v1373_v49 = vpop.eup %1372 }
 0xbf4   :  { %v657_v52 = vmul.f32 %v1373_v49, %v567_v36 }
 0xc57   :  { %v660_v50 = vpop.permute.xlu0 %659 }
 0xc58   :  { %v662_v51 = vmul.f32 %v1373_v49, %v660_v50  ;;  %v977_v50 = vld [vmem:[%s1668_s4 + $0x18] sm:$0xff]  ;;  %s1429_s4 = smov [#allocation2]  }
 0xc59   :  { %s1068_s10 = sshll.u32 %s1429_s4, 4  ;;  %s1069_s10 = int_to_ptr.vmem [resolvable:$true] %s1068_s10 }
 0xc5a   :  { %664 = vrot.lane.b32.xlu1 %v662_v51, %s1428_s3  ;;  %v1328_v51 = vpack.c.bf16 %v977_v50, %v976_v48  ;;  %s1400_s11 = scalar_lea.vmem %s1069_s10, 128  ;;  %p1405_p1 = scmp.lt.s32.totalorder %s1069_s10, %s1069_s10 }
 0xc5b   :  { %p1401_p0 = scmp.ne.s32.totalorder %s1069_s10, %s1400_s11  ;;  %p1406_p2 = scmp.lt.s32.totalorder %s1400_s11, %s1400_s11 }
 0xc5d   :  { %p1407_p3 = por %p1406_p2, %p1405_p1 }
 0xc5f   :  { %p1408_p4 = pnand %p1407_p3, %p1401_p0 }
 0xccc   :  { %v665_v53 = vpop.permute.xlu1 %664 }
 0xccd   :  { %v667_v54 = vadd.f32 %v665_v53, %v657_v52 }
 0xccf   :  { %1374 = vtanh.f32 %v667_v54 }
 0xcd9   :  { %v1375_v55 = vpop.eup %1374 }
 0xcda   :  { %670 = vrot.lane.b32.xlu0 %v1375_v55, %s1427_s13 }
 0xd4c   :  { %v671_v56 = vpop.permute.xlu0 %670 }
 0xd4d   :  { %v673_v57 = vmul.f32 %v1373_v49, %v671_v56  ;;  %v1325_v49 = vpack.c.bf16 %v975_v47, %v974_v61  ;;  %v1100_v56 = vld [vmem:[%s1669_s5] ss:$0 sm:$0xff] }
 0xd4f   :  { %675 = vrot.lane.b32.xlu1 %v673_v57, %s1428_s3 }
 0xdc1   :  { %v676_v58 = vpop.permute.xlu1 %675 }
 0xdc2   :  { %1237 = vmatmul.mubr.msk.f32.vlgmr.msra.gmra.mrb[6].mxu1 %vm175_vm2, %v676_v58 }
 0xdc3   :  { %1320 = vmatpush3.bf16.msra.mxu1 %v1481_v7  ;;  %1258 = vmatprep.mubr.msk.f32.mxu1 %vm1425_vm1, %v1426_v10 }
 0xdc4   :  { %1321 = vmatprep.subr.bf16.mxu1 %v1424_v3 }
 0xdc7   :  { %1323 = vmatpush3.bf16.msra.mxu1 %v1496_v12 }
 0xe95   :  { %v745_v63 = vpop.f32.mrb[6].mxu1 }
 0xe96   :  { %v749_v0 = vadd.f32 %v745_v63, %v162_v60  ;;  %v1238_v1 = vpop.f32.mrb[7].mxu1 }
 0xe98   :  { %1376 = vtanh.f32 %v749_v0  ;;  %v1095_v4 = vmul.f32 -1.442695, %v749_v0 }
 0xe9a   :  { %1378 = vpow2.f32 %v1095_v4 }
 0xea2   :  { %v1377_v2 = vpop.eup %1376 }
 0xea3   :  { %759 = vrot.lane.b32.xlu0 %v1377_v2, %s1427_s13 }
 0xea4   :  { %v1379_v7 = vpop.eup %1378 }
 0xea5   :  { %v753_v5 = vadd.f32 1.0, %v1379_v7 }
 0xea7   :  { %1380 = vrcp.f32 %v753_v5 }
 0xeb1   :  { %v1381_v6 = vpop.eup %1380 }
 0xeb2   :  { %v757_v12 = vmul.f32 %v1381_v6, %v667_v54 }
 0xf15   :  { %v760_v8 = vpop.permute.xlu0 %759 }
 0xf16   :  { %v762_v9 = vmul.f32 %v1381_v6, %v760_v8 }
 0xf18   :  { %764 = vrot.lane.b32.xlu1 %v762_v9, %s1428_s3 }
 0xf8a   :  { %v765_v11 = vpop.permute.xlu1 %764 }
 0xf8b   :  { %v767_v59 = vadd.f32 %v765_v11, %v757_v12 }
 0xf8d   :  { %1382 = vtanh.f32 %v767_v59 }
 0xf97   :  { %v1383_v14 = vpop.eup %1382 }
 0xf98   :  { %770 = vrot.lane.b32.xlu0 %v1383_v14, %s1427_s13 }
0x100a   :  { %v771_v15 = vpop.permute.xlu0 %770 }
0x100b   :  { %v773_v16 = vmul.f32 %v1381_v6, %v771_v15 }
0x100d   :  { %775 = vrot.lane.b32.xlu1 %v773_v16, %s1428_s3 }
0x107f   :  { %v776_v17 = vpop.permute.xlu1 %775 }
0x1080   :  { %1248 = vmatmul.mubr.msk.f32.vlgmr.msra.gmra.mrb[12].mxu0 %vm175_vm2, %v776_v17 }
0x1081   :  { %1269 = vmatprep.mubr.msk.f32.mxu0 %vm1425_vm1, %v1426_v10  ;;  %1326 = vmatpush3.bf16.msra.mxu0 %v1325_v49 }
0x1082   :  { %1327 = vmatprep.subr.bf16.mxu0 %v1424_v3 }
0x1085   :  { %1329 = vmatpush3.bf16.msra.mxu0 %v1328_v51 }
0x1153   :  { %v845_v19 = vpop.f32.mrb[12].mxu0 }
0x1154   :  { %v849_v20 = vadd.f32 %v845_v19, %v167_v18  ;;  %v1249_v21 = vpop.f32.mrb[13].mxu0 }
0x1156   :  { %1384 = vtanh.f32 %v849_v20  ;;  %v1097_v23 = vmul.f32 -1.442695, %v849_v20 }
0x1158   :  { %1386 = vpow2.f32 %v1097_v23 }
0x1160   :  { %v1385_v22 = vpop.eup %1384 }
0x1161   :  { %859 = vrot.lane.b32.xlu0 %v1385_v22, %s1427_s13 }
0x1162   :  { %v1387_v24 = vpop.eup %1386 }
0x1163   :  { %v853_v25 = vadd.f32 1.0, %v1387_v24 }
0x1165   :  { %1388 = vrcp.f32 %v853_v25 }
0x116f   :  { %v1389_v26 = vpop.eup %1388 }
0x1170   :  { %v857_v10 = vmul.f32 %v1389_v26, %v767_v59 }
0x11d3   :  { %v860_v27 = vpop.permute.xlu0 %859 }
0x11d4   :  { %v862_v28 = vmul.f32 %v1389_v26, %v860_v27 }
0x11d6   :  { %864 = vrot.lane.b32.xlu1 %v862_v28, %s1428_s3 }
0x1248   :  { %v865_v29 = vpop.permute.xlu1 %864 }
0x1249   :  { %v867_v62 = vadd.f32 %v865_v29, %v857_v10 }
0x124b   :  { %1390 = vtanh.f32 %v867_v62 }
0x1255   :  { %v1391_v30 = vpop.eup %1390 }
0x1256   :  { %870 = vrot.lane.b32.xlu0 %v1391_v30, %s1427_s13 }
0x12c8   :  { %v871_v31 = vpop.permute.xlu0 %870 }
0x12c9   :  { %v873_v32 = vmul.f32 %v1389_v26, %v871_v31 }
0x12cb   :  { %875 = vrot.lane.b32.xlu1 %v873_v32, %s1428_s3 }
0x133d   :  { %v876_v33 = vpop.permute.xlu1 %875 }
0x133e   :  { %1259 = vmatmul.mubr.msk.f32.vlgmr.msra.gmra.mrb[8].mxu1 %vm175_vm2, %v876_v33 }
0x1411   :  { %v945_v35 = vpop.f32.mrb[8].mxu1 }
0x1412   :  { %v949_v36 = vadd.f32 %v945_v35, %v172_v34  ;;  %v1260_v37 = vpop.f32.mrb[9].mxu1 }
0x1414   :  { %1392 = vtanh.f32 %v949_v36  ;;  %v1099_v39 = vmul.f32 -1.442695, %v949_v36 }
0x1416   :  { %1394 = vpow2.f32 %v1099_v39 }
0x141e   :  { %v1393_v38 = vpop.eup %1392 }
0x141f   :  { %959 = vrot.lane.b32.xlu0 %v1393_v38, %s1427_s13 }
0x1420   :  { %v1395_v40 = vpop.eup %1394 }
0x1421   :  { %v953_v41 = vadd.f32 1.0, %v1395_v40 }
0x1423   :  { %1396 = vrcp.f32 %v953_v41 }
0x142d   :  { %v1397_v42 = vpop.eup %1396 }
0x142e   :  { %v957_v45 = vmul.f32 %v1397_v42, %v867_v62 }
0x1491   :  { %v960_v43 = vpop.permute.xlu0 %959 }
0x1492   :  { %v962_v44 = vmul.f32 %v1397_v42, %v960_v43 }
0x1494   :  { %964 = vrot.lane.b32.xlu1 %v962_v44, %s1428_s3 }
0x1506   :  { %v965_v46 = vpop.permute.xlu1 %964 }
0x1507   :  { %v967_v13 = vadd.f32 %v965_v46, %v957_v45 }
0x1509   :  { %1398 = vtanh.f32 %v967_v13 }
0x1513   :  { %v1399_v52 = vpop.eup %1398 }
0x1514   :  { %970 = vrot.lane.b32.xlu0 %v1399_v52, %s1427_s13 }
0x1586   :  { %v971_v53 = vpop.permute.xlu0 %970 }
0x1587   :  { %v973_v54 = vmul.f32 %v1397_v42, %v971_v53 }
0x1589   :  { %986 = vrot.lane.b32.xlu1 %v973_v54, %s1428_s3 }
0x15fb   :  { %v987_v55 = vpop.permute.xlu1 %986 }
0x15fc   :  { %1270 = vmatmul.mubr.msk.f32.vlgmr.msra.gmra.mrb[14].mxu0 %vm175_vm2, %v987_v55 }
0x16cf   :  { %v1056_v57 = vpop.f32.mrb[14].mxu0 }
0x16d0   :  { %v1057_v3 = vadd.f32 %v1100_v56, %v1056_v57  ;;  %v1271_v58 = vpop.f32.mrb[15].mxu0 }
0x16d2   :  { %1061 = vst.msk [vmem:[#allocation2] sm:$0xff] %vm1060_vm3, %v1057_v3 }
0x16d3   :  { %1411 = shalt.err (!%p1408_p4)
}
0x16d4   :  { %s1412_s13 = scalar_lea.hbm %s1670_s6, 128 }
0x16d5   :  { %p1413_p5 = scmp.ne.s32.totalorder %s1670_s6, %s1412_s13  ;;  %p1416_p6 = scmp.lt.u32.totalorder %s1412_s13, %s1670_s6 }
0x16d7   :  { %p1418_p7 = pnand %p1416_p6, %p1413_p5 }
0x16d9   :  { %1421 = shalt.err (!%p1418_p7)
}
0x16da   :  { %1071 = dma.vmem_to_hbm [thread:$0]  %s1069_s10, 128, %s1670_s6, [#allocation3]  }
0x16db   :  { %1422 = dma.done.wait [#allocation3], 128  }
0x16dc   :  { %1423 = vsyncadd [#allocation3], 4294967168 }
0x16dd   :  { %1075 = vsyncpa [#allocation3], 1 }

</bundles_post_ra>
